<compile_context>
chip_gen: v7x
topology: tpu7x:2x2x1
jax: 0.10.0
libtpu: 0.0.40
codegen_flags: <defaults>
</compile_context>

<pallas_src>
import functools
import math

import jax
import jax.numpy as jnp
from jax.experimental import pallas as pl
from jax.experimental.pallas import tpu as pltpu

EPS = 1e-5  # PyTorch BatchNorm1d default eps


def _round_up(v, m):
    return ((v + m - 1) // m) * m


# ------------------------------- Pallas kernel -------------------------------

def _backbone_kernel(*refs, depth, L, cins, cbs, front, fp, pad_max,
                     has_bottleneck, use_residual):
    """Whole-backbone fused forward for one batch element.

    refs = [x, {per block: [bneck_w?, packed_w, shift, (res_w, res_shift)?]},
            out, bp_scratch, xp_scratch, im_scratch]
    """
    max_ks = 2 * pad_max + 1

    it = iter(refs)
    x_ref = next(it)                                   # (1, L, Cin) bf16
    blocks = []
    for d in range(depth):
        blk = {}
        if has_bottleneck:
            blk['bneck'] = next(it)                    # (Cin_d, Cb) bf16
        blk['packed'] = next(it)                       # (max_ks*Cb + Cin_d, Ctot) bf16
        blk['shift'] = next(it)                        # (1, Ctot) f32
        if use_residual and d % 3 == 2:
            blk['res_w'] = next(it)                    # (Cres, Ctot) bf16
            blk['res_shift'] = next(it)                # (1, Ctot) f32
        blocks.append(blk)
    o_ref = next(it)                                   # (1, L, Ctot) bf16
    bp_ref = next(it)   # VMEM (front + L + front, cb_max) bf16 : zero-padded bottleneck slab
    xp_ref = next(it)   # VMEM (fp + L + fp, cin_max)    bf16 : -inf padded input for maxpool
    im_ref = next(it)   # VMEM (L, max_ks*cb_max + cin_max) bf16 : im2col + pooled columns

    cb_max = bp_ref.shape[1]
    cin_max = xp_ref.shape[1]

    # Halo-only fill (constant rows; interior L rows are fully overwritten each
    # block).  Done every grid step so it is megacore-safe under "parallel".
    if pad_max > 0:
        zero_halo = jnp.zeros((front, cb_max), bp_ref.dtype)
        bp_ref[pl.ds(0, front), :] = zero_halo
        bp_ref[pl.ds(front + L, front), :] = zero_halo
    ninf_halo = jnp.full((fp, cin_max), -jnp.inf, xp_ref.dtype)
    xp_ref[pl.ds(0, fp), :] = ninf_halo
    xp_ref[pl.ds(fp + L, fp), :] = ninf_halo

    cur = x_ref[0]                                     # (L, Cin) bf16
    res = cur                                          # residual-group input

    for d in range(depth):                             # static unroll over depth
        blk = blocks[d]
        cin = cins[d]
        cb = cbs[d]

        # ---- bottleneck 1x1 conv (no bias / BN / act) ----
        if has_bottleneck:
            bottled = jnp.dot(cur, blk['bneck'][...],
                              preferred_element_type=jnp.float32).astype(jnp.bfloat16)
        else:
            bottled = cur

        # ---- zero-padded slab + im2col: every tap folded into the contraction ----
        bp_ref[pl.ds(front, L), 0:cb] = bottled
        base = front - pad_max
        for u in range(max_ks):                        # static unroll, static offsets
            im_ref[:, u * cb:(u + 1) * cb] = bp_ref[pl.ds(base + u, L), 0:cb]

        # ---- MaxPool1d(3,1,1) on the block input, appended as extra columns ----
        xp_ref[pl.ds(fp, L), 0:cin] = cur
        pooled = jnp.maximum(
            jnp.maximum(xp_ref[pl.ds(fp - 1, L), 0:cin], xp_ref[pl.ds(fp, L), 0:cin]),
            xp_ref[pl.ds(fp + 1, L), 0:cin])
        kb = max_ks * cb
        im_ref[:, kb:kb + cin] = pooled

        # ---- one MXU matmul -> (L, Ctot); BN scale pre-folded into the weights ----
        y = jnp.dot(im_ref[:, 0:kb + cin], blk['packed'][...],
                    preferred_element_type=jnp.float32)
        y = jnp.maximum(y + blk['shift'][...], 0.0)    # + shift, ReLU (f32 epilogue)

        # ---- fused Shortcut1d: relu(y + bn(conv1x1(res))) ----
        if use_residual and d % 3 == 2:
            r = jnp.dot(res, blk['res_w'][...], preferred_element_type=jnp.float32)
            y = jnp.maximum(y + r + blk['res_shift'][...], 0.0)
            cur = y.astype(jnp.bfloat16)
            res = cur
        else:
            cur = y.astype(jnp.bfloat16)

    o_ref[0] = cur.astype(o_ref.dtype)


# ------------------------------ Pallas wrapper -------------------------------

def inception_backbone_fused(x_nlc, kparams, *, kss, depth, nb_filters,
                             bottleneck_size, use_residual):
    """Fused whole-backbone forward. x_nlc: (N, L, Cin) bf16 -> (N, L, Ctot) bf16."""
    N, L, Cin = x_nlc.shape
    n_br = len(kss)
    F = nb_filters
    Ctot = (n_br + 1) * F
    max_ks = max(kss)
    pad_max = (max_ks - 1) // 2
    front = _round_up(pad_max, 16) if pad_max > 0 else 0   # bf16 sublane-pair aligned
    fp = 16
    has_b = bottleneck_size > 0

    cins = tuple([Cin] + [Ctot] * (depth - 1))
    cbs = tuple((bottleneck_size if has_b else c) for c in cins)
    cb_max = max(cbs)
    cin_max = max(cins)

    inputs = [x_nlc]
    in_specs = [pl.BlockSpec((1, L, Cin), lambda n: (n, 0, 0))]

    def _const(arr):
        inputs.append(arr)
        in_specs.append(pl.BlockSpec(arr.shape, lambda n: (0, 0)))

    for d in range(depth):
        bp = kparams['im'][d]
        if has_b:
            _const(bp['bneck_w'])
        _const(bp['packed_w'])
        _const(bp['shift'])
        if use_residual and d % 3 == 2:
            sk = kparams['sk'][d // 3]
            _const(sk['res_w'])
            _const(sk['res_shift'])

    kern = functools.partial(
        _backbone_kernel, depth=depth, L=L, cins=cins, cbs=cbs, front=front,
        fp=fp, pad_max=pad_max, has_bottleneck=has_b, use_residual=use_residual)

    scratch_shapes = [
        pltpu.VMEM((front + L + front, cb_max), jnp.bfloat16),
        pltpu.VMEM((fp + L + fp, cin_max), jnp.bfloat16),
        pltpu.VMEM((L, max_ks * cb_max + cin_max), jnp.bfloat16),
    ]

    # advisory cost estimate
    flops = 0
    res_cin = Cin
    for d in range(depth):
        cin, cb = cins[d], cbs[d]
        if has_b:
            flops += 2 * L * cin * cb
        flops += 2 * L * (max_ks * cb + cin) * Ctot
        if use_residual and d % 3 == 2:
            flops += 2 * L * res_cin * Ctot
            res_cin = Ctot
    flops *= N
    bytes_accessed = sum(int(a.size) * jnp.dtype(a.dtype).itemsize for a in inputs)
    bytes_accessed += N * L * Ctot * 2

    # per-generation VMEM limit (128 MiB v5e/v6e, 64 MiB v7x) with headroom
    act_bytes = (L * Cin + L * Ctot) * 2
    weight_bytes = sum(int(a.size) * jnp.dtype(a.dtype).itemsize for a in inputs[1:])
    scratch_bytes = 2 * ((front + L + front) * cb_max + (fp + L + fp) * cin_max
                         + L * (max_ks * cb_max + cin_max))
    live_bytes = 4 * L * Ctot + 4 * L * max(Cin, Ctot)   # cross-block live values
    est = 2 * (act_bytes + weight_bytes) + scratch_bytes + live_bytes + (1 << 20)
    try:
        cap = int(getattr(pltpu.get_tpu_info(), "vmem_capacity_bytes", 64 << 20))
    except Exception:  # pragma: no cover - conservative fallback
        cap = 64 << 20
    vmem_limit = int(min(max(2 * est, 16 << 20), int(0.8 * cap)))

    return pl.pallas_call(
        kern,
        out_shape=jax.ShapeDtypeStruct((N, L, Ctot), x_nlc.dtype),
        grid=(N,),
        in_specs=in_specs,
        out_specs=pl.BlockSpec((1, L, Ctot), lambda n: (n, 0, 0)),
        scratch_shapes=scratch_shapes,
        compiler_params=pltpu.CompilerParams(
            dimension_semantics=("parallel",),
            vmem_limit_bytes=vmem_limit),
        cost_estimate=pl.CostEstimate(flops=flops, transcendentals=0,
                                      bytes_accessed=bytes_accessed),
    )(*inputs)


# -------------------------- parameter initialization -------------------------

def _conv_w(key, cin, cout, k):
    # PyTorch Conv1d default (kaiming-uniform) bound; stored as (K, Cin, Cout)
    bound = 1.0 / math.sqrt(cin * k)
    return jax.random.uniform(key, (k, cin, cout), jnp.float32, -bound, bound)


def _bn_affine(key, c):
    # deterministic (seeded) gamma/beta/running stats, folded into scale/shift
    k1, k2, k3, k4 = jax.random.split(key, 4)
    gamma = jax.random.uniform(k1, (c,), jnp.float32, 0.5, 1.5)
    beta = jax.random.uniform(k2, (c,), jnp.float32, -0.5, 0.5)
    mean = 0.1 * jax.random.normal(k3, (c,), jnp.float32)
    var = jax.random.uniform(k4, (c,), jnp.float32, 0.5, 1.5)
    scale = gamma / jnp.sqrt(var + EPS)
    shift = beta - mean * scale
    return scale, shift


def init_raw_block(key, ni, nb_filters, kss, bottleneck_size):
    n_br = len(kss)
    Ctot = (n_br + 1) * nb_filters
    cb = bottleneck_size if bottleneck_size > 0 else ni
    keys = jax.random.split(key, n_br + 3)
    raw = {'bneck_w': _conv_w(keys[0], ni, cb, 1)[0] if bottleneck_size > 0 else None,
           'branch_ws': [_conv_w(keys[1 + b], cb, nb_filters, ks)
                         for b, ks in enumerate(kss)],
           'pool_w': _conv_w(keys[1 + n_br], ni, nb_filters, 1)[0]}
    raw['bn_scale'], raw['bn_shift'] = _bn_affine(keys[2 + n_br], Ctot)
    return raw


def init_raw_shortcut(key, ni, nf):
    k1, k2 = jax.random.split(key)
    scale, shift = _bn_affine(k2, nf)
    return {'conv_w': _conv_w(k1, ni, nf, 1)[0], 'bn_scale': scale, 'bn_shift': shift}


def init_backbone_raw(key, input_channels, kss, depth, bottleneck_size, nb_filters):
    assert depth % 3 == 0
    n_ks = len(kss) + 1
    keys = jax.random.split(key, depth + depth // 3)
    im = [init_raw_block(keys[d],
                         input_channels if d == 0 else n_ks * nb_filters,
                         nb_filters, kss, bottleneck_size)
          for d in range(depth)]
    sk = [init_raw_shortcut(keys[depth + s],
                            input_channels if s == 0 else n_ks * nb_filters,
                            n_ks * nb_filters)
          for s in range(depth // 3)]
    return {'im': im, 'sk': sk}


def pack_backbone_params(raw, *, kss, nb_filters):
    """Pack per-block conv weights + pool conv into one block matrix whose rows
    line up with the tap-major im2col (pooled input appended as the last Cin
    columns), with the folded BatchNorm scale multiplied into its columns."""
    n_br = len(kss)
    F = nb_filters
    Ctot = (n_br + 1) * F
    max_ks = max(kss)
    pad_max = (max_ks - 1) // 2
    kp = {'im': [], 'sk': []}
    for rb in raw['im']:
        ni = rb['pool_w'].shape[0]
        cb = rb['bneck_w'].shape[1] if rb['bneck_w'] is not None else ni
        kb = max_ks * cb
        W = jnp.zeros((kb + ni, Ctot), jnp.float32)
        for b, ks in enumerate(kss):
            assert ks % 2 == 1, "InceptionTime kernel sizes are odd"
            w = rb['branch_ws'][b]                               # (ks, cb, F)
            off = (pad_max - (ks - 1) // 2) * cb
            W = W.at[off:off + ks * cb, b * F:(b + 1) * F].set(w.reshape(ks * cb, F))
        W = W.at[kb:kb + ni, n_br * F:Ctot].set(rb['pool_w'])    # pool 1x1 conv
        W = W * rb['bn_scale'][None, :]                          # fold BN scale
        blk = {'packed_w': W.astype(jnp.bfloat16),
               'shift': rb['bn_shift'][None, :].astype(jnp.float32)}
        if rb['bneck_w'] is not None:
            blk['bneck_w'] = rb['bneck_w'].astype(jnp.bfloat16)
        kp['im'].append(blk)
    for rs in raw['sk']:
        kp['sk'].append({
            'res_w': (rs['conv_w'] * rs['bn_scale'][None, :]).astype(jnp.bfloat16),
            'res_shift': rs['bn_shift'][None, :].astype(jnp.float32)})
    return kp


# -------------------------------- forward pass -------------------------------

def inception_backbone_forward(x_ncl, kparams, *, kss, depth, nb_filters,
                               bottleneck_size, use_residual):
    # x_ncl : (N, C, L) as in PyTorch Conv1d; returns (N, C_out, L) float32.
    x = jnp.transpose(x_ncl, (0, 2, 1)).astype(jnp.bfloat16)    # NCL -> NLC
    out = inception_backbone_fused(
        x, kparams, kss=kss, depth=depth, nb_filters=nb_filters,
        bottleneck_size=bottleneck_size, use_residual=use_residual)
    return jnp.transpose(out, (0, 2, 1)).astype(jnp.float32)    # NLC -> NCL


# --------------------- pure-JAX f32 reference (raw params) -------------------

def _ref_block(x, raw, kss, F):
    N, L, Cin = x.shape
    bottled = x @ raw['bneck_w'] if raw['bneck_w'] is not None else x
    outs = []
    for b, ks in enumerate(kss):
        pad = (ks - 1) // 2
        bp = jnp.pad(bottled, ((0, 0), (pad, pad), (0, 0)))
        w = raw['branch_ws'][b]
        outs.append(sum(bp[:, t:t + L, :] @ w[t] for t in range(ks)))
    xp = jnp.pad(x, ((0, 0), (1, 1), (0, 0)), constant_values=-jnp.inf)
    pooled = jnp.maximum(jnp.maximum(xp[:, 0:L], xp[:, 1:L + 1]), xp[:, 2:L + 2])
    outs.append(pooled @ raw['pool_w'])
    y = jnp.concatenate(outs, axis=-1)
    return jnp.maximum(y * raw['bn_scale'] + raw['bn_shift'], 0.0)


def inception_backbone_reference(x_ncl, raw, *, kss, depth, nb_filters, use_residual):
    x = jnp.transpose(x_ncl, (0, 2, 1)).astype(jnp.float32)
    input_res = x
    for d in range(depth):
        y = _ref_block(x, raw['im'][d], kss, nb_filters)
        if use_residual and d % 3 == 2:
            rs = raw['sk'][d // 3]
            r = (input_res @ rs['conv_w']) * rs['bn_scale'] + rs['bn_shift']
            y = jnp.maximum(y + r, 0.0)
            input_res = y
        x = y
    return jnp.transpose(x, (0, 2, 1))


# ------------------------------------ main ------------------------------------

if __name__ == "__main__":
    # small but representative configuration
    N, C, L = 2, 4, 16
    kss = (5, 3)
    depth = 3
    bottleneck_size = 8
    nb_filters = 8
    use_residual = True

    key = jax.random.PRNGKey(0)
    kx, kp = jax.random.split(key)
    x = jax.random.normal(kx, (N, C, L), jnp.float32)
    raw = init_backbone_raw(kp, C, kss, depth, bottleneck_size, nb_filters)
    kparams = pack_backbone_params(raw, kss=kss, nb_filters=nb_filters)

    fwd = jax.jit(functools.partial(
        inception_backbone_forward, kss=kss, depth=depth, nb_filters=nb_filters,
        bottleneck_size=bottleneck_size, use_residual=use_residual))
    out = jax.block_until_ready(fwd(x, kparams))

    assert out.shape == (N, (len(kss) + 1) * nb_filters, L), out.shape
    assert bool(jnp.all(jnp.isfinite(out)))

    # pure-JAX f32 reference with the same (unfolded) parameters; the kernel
    # runs bf16 MXU operands with BN scale folded into bf16 weights and f32
    # accumulation, hence the loose tolerance.
    ref = inception_backbone_reference(x, raw, kss=kss, depth=depth,
                                       nb_filters=nb_filters,
                                       use_residual=use_residual)
    err = float(jnp.max(jnp.abs(out - ref) / (1.0 + jnp.abs(ref))))
    assert err < 0.2, f"mismatch vs reference: max normalized err {err}"

    print("KERNEL_OK")
</pallas_src>

<mosaic_0001>
module attributes {stable_mosaic.version = 11 : i64} {
  func.func @_backbone_kernel(%arg0: i32, %arg1: memref<1x16x4xbf16, #tpu.memory_space<vmem>>, %arg2: memref<4x8xbf16, #tpu.memory_space<vmem>>, %arg3: memref<44x24xbf16, #tpu.memory_space<vmem>>, %arg4: memref<1x24xf32, #tpu.memory_space<vmem>>, %arg5: memref<24x8xbf16, #tpu.memory_space<vmem>>, %arg6: memref<64x24xbf16, #tpu.memory_space<vmem>>, %arg7: memref<1x24xf32, #tpu.memory_space<vmem>>, %arg8: memref<24x8xbf16, #tpu.memory_space<vmem>>, %arg9: memref<64x24xbf16, #tpu.memory_space<vmem>>, %arg10: memref<1x24xf32, #tpu.memory_space<vmem>>, %arg11: memref<4x24xbf16, #tpu.memory_space<vmem>>, %arg12: memref<1x24xf32, #tpu.memory_space<vmem>>, %arg13: memref<1x16x24xbf16, #tpu.memory_space<vmem>>, %arg14: memref<48x8xbf16, #tpu.memory_space<vmem>>, %arg15: memref<48x24xbf16, #tpu.memory_space<vmem>>, %arg16: memref<16x64xbf16, #tpu.memory_space<vmem>>) attributes {dimension_semantics = [#tpu.dimension_semantics<parallel>], iteration_bounds = array<i64: 2>, scalar_prefetch = 0 : i64, scratch_operands = 3 : i64, tpu.core_type = #tpu.core_type<tc>, window_params = [{transform_indices = @transform_0, window_bounds = array<i64: 1, 16, 4>}, {pipeline_mode = #tpu.pipeline_mode<synchronous>, transform_indices = @transform_1, window_bounds = array<i64: 4, 8>}, {pipeline_mode = #tpu.pipeline_mode<synchronous>, transform_indices = @transform_2, window_bounds = array<i64: 44, 24>}, {pipeline_mode = #tpu.pipeline_mode<synchronous>, transform_indices = @transform_3, window_bounds = array<i64: 1, 24>}, {pipeline_mode = #tpu.pipeline_mode<synchronous>, transform_indices = @transform_4, window_bounds = array<i64: 24, 8>}, {pipeline_mode = #tpu.pipeline_mode<synchronous>, transform_indices = @transform_5, window_bounds = array<i64: 64, 24>}, {pipeline_mode = #tpu.pipeline_mode<synchronous>, transform_indices = @transform_6, window_bounds = array<i64: 1, 24>}, {pipeline_mode = #tpu.pipeline_mode<synchronous>, transform_indices = @transform_7, window_bounds = array<i64: 24, 8>}, {pipeline_mode = #tpu.pipeline_mode<synchronous>, transform_indices = @transform_8, window_bounds = array<i64: 64, 24>}, {pipeline_mode = #tpu.pipeline_mode<synchronous>, transform_indices = @transform_9, window_bounds = array<i64: 1, 24>}, {pipeline_mode = #tpu.pipeline_mode<synchronous>, transform_indices = @transform_10, window_bounds = array<i64: 4, 24>}, {pipeline_mode = #tpu.pipeline_mode<synchronous>, transform_indices = @transform_11, window_bounds = array<i64: 1, 24>}, {transform_indices = @transform_12, window_bounds = array<i64: 1, 16, 24>}]} {
    %cst = arith.constant 0.000000e+00 : bf16
    %0 = vector.broadcast %cst : bf16 to vector<16x8xbf16>
    %c0 = arith.constant 0 : index
    %c0_0 = arith.constant 0 : index
    %1 = vector.load %arg14[%c0, %c0_0] : memref<48x8xbf16, #tpu.memory_space<vmem>>, vector<16x8xbf16>
    tpu.vector_store %arg14[%c0, %c0_0], %0 {strides = array<i32>} : memref<48x8xbf16, #tpu.memory_space<vmem>>, vector<16x8xbf16>,
    %c32 = arith.constant 32 : index
    %c0_1 = arith.constant 0 : index
    %2 = vector.load %arg14[%c32, %c0_1] : memref<48x8xbf16, #tpu.memory_space<vmem>>, vector<16x8xbf16>
    tpu.vector_store %arg14[%c32, %c0_1], %0 {strides = array<i32>} : memref<48x8xbf16, #tpu.memory_space<vmem>>, vector<16x8xbf16>,
    %cst_2 = arith.constant 0xFF80 : bf16
    %3 = vector.broadcast %cst_2 : bf16 to vector<16x24xbf16>
    %c0_3 = arith.constant 0 : index
    %c0_4 = arith.constant 0 : index
    %4 = vector.load %arg15[%c0_3, %c0_4] : memref<48x24xbf16, #tpu.memory_space<vmem>>, vector<16x24xbf16>
    tpu.vector_store %arg15[%c0_3, %c0_4], %3 {strides = array<i32>} : memref<48x24xbf16, #tpu.memory_space<vmem>>, vector<16x24xbf16>,
    %c32_5 = arith.constant 32 : index
    %c0_6 = arith.constant 0 : index
    %5 = vector.load %arg15[%c32_5, %c0_6] : memref<48x24xbf16, #tpu.memory_space<vmem>>, vector<16x24xbf16>
    tpu.vector_store %arg15[%c32_5, %c0_6], %3 {strides = array<i32>} : memref<48x24xbf16, #tpu.memory_space<vmem>>, vector<16x24xbf16>,
    %c0_7 = arith.constant 0 : index
    %c0_8 = arith.constant 0 : index
    %c0_9 = arith.constant 0 : index
    %6 = vector.load %arg1[%c0_7, %c0_8, %c0_9] : memref<1x16x4xbf16, #tpu.memory_space<vmem>>, vector<1x16x4xbf16>
    %7 = vector.shape_cast %6 : vector<1x16x4xbf16> to vector<16x4xbf16>
    %c0_10 = arith.constant 0 : index
    %c0_11 = arith.constant 0 : index
    %8 = vector.load %arg2[%c0_10, %c0_11] : memref<4x8xbf16, #tpu.memory_space<vmem>>, vector<4x8xbf16>
    %cst_12 = arith.constant dense<0.000000e+00> : vector<16x8xf32>
    %9 = tpu.matmul %7, %8, %cst_12 {dimension_numbers = #tpu.dot_dimension_numbers<[1], [0], [0], [1], [0, 0, 1, 1], [], []>} : vector<16x4xbf16>, vector<4x8xbf16>, vector<16x8xf32> -> vector<16x8xf32>
    %10 = arith.truncf %9 : vector<16x8xf32> to vector<16x8xbf16>
    %c16 = arith.constant 16 : index
    %c0_13 = arith.constant 0 : index
    %11 = vector.load %arg14[%c16, %c0_13] : memref<48x8xbf16, #tpu.memory_space<vmem>>, vector<16x8xbf16>
    tpu.vector_store %arg14[%c16, %c0_13], %10 {strides = array<i32>} : memref<48x8xbf16, #tpu.memory_space<vmem>>, vector<16x8xbf16>,
    %c14 = arith.constant 14 : index
    %c0_14 = arith.constant 0 : index
    %12 = vector.load %arg14[%c14, %c0_14] : memref<48x8xbf16, #tpu.memory_space<vmem>>, vector<16x8xbf16>
    %c0_15 = arith.constant 0 : index
    %c0_16 = arith.constant 0 : index
    %13 = vector.load %arg16[%c0_15, %c0_16] : memref<16x64xbf16, #tpu.memory_space<vmem>>, vector<16x8xbf16>
    tpu.vector_store %arg16[%c0_15, %c0_16], %12 {strides = array<i32>} : memref<16x64xbf16, #tpu.memory_space<vmem>>, vector<16x8xbf16>,
    %c15 = arith.constant 15 : index
    %c0_17 = arith.constant 0 : index
    %14 = vector.load %arg14[%c15, %c0_17] : memref<48x8xbf16, #tpu.memory_space<vmem>>, vector<16x8xbf16>
    %c0_18 = arith.constant 0 : index
    %c8 = arith.constant 8 : index
    %15 = vector.load %arg16[%c0_18, %c8] : memref<16x64xbf16, #tpu.memory_space<vmem>>, vector<16x8xbf16>
    tpu.vector_store %arg16[%c0_18, %c8], %14 {strides = array<i32>} : memref<16x64xbf16, #tpu.memory_space<vmem>>, vector<16x8xbf16>,
    %c16_19 = arith.constant 16 : index
    %c0_20 = arith.constant 0 : index
    %16 = vector.load %arg14[%c16_19, %c0_20] : memref<48x8xbf16, #tpu.memory_space<vmem>>, vector<16x8xbf16>
    %c0_21 = arith.constant 0 : index
    %c16_22 = arith.constant 16 : index
    %17 = vector.load %arg16[%c0_21, %c16_22] : memref<16x64xbf16, #tpu.memory_space<vmem>>, vector<16x8xbf16>
    tpu.vector_store %arg16[%c0_21, %c16_22], %16 {strides = array<i32>} : memref<16x64xbf16, #tpu.memory_space<vmem>>, vector<16x8xbf16>,
    %c17 = arith.constant 17 : index
    %c0_23 = arith.constant 0 : index
    %18 = vector.load %arg14[%c17, %c0_23] : memref<48x8xbf16, #tpu.memory_space<vmem>>, vector<16x8xbf16>
    %c0_24 = arith.constant 0 : index
    %c24 = arith.constant 24 : index
    %19 = vector.load %arg16[%c0_24, %c24] : memref<16x64xbf16, #tpu.memory_space<vmem>>, vector<16x8xbf16>
    tpu.vector_store %arg16[%c0_24, %c24], %18 {strides = array<i32>} : memref<16x64xbf16, #tpu.memory_space<vmem>>, vector<16x8xbf16>,
    %c18 = arith.constant 18 : index
    %c0_25 = arith.constant 0 : index
    %20 = vector.load %arg14[%c18, %c0_25] : memref<48x8xbf16, #tpu.memory_space<vmem>>, vector<16x8xbf16>
    %c0_26 = arith.constant 0 : index
    %c32_27 = arith.constant 32 : index
    %21 = vector.load %arg16[%c0_26, %c32_27] : memref<16x64xbf16, #tpu.memory_space<vmem>>, vector<16x8xbf16>
    tpu.vector_store %arg16[%c0_26, %c32_27], %20 {strides = array<i32>} : memref<16x64xbf16, #tpu.memory_space<vmem>>, vector<16x8xbf16>,
    %c16_28 = arith.constant 16 : index
    %c0_29 = arith.constant 0 : index
    %22 = vector.load %arg15[%c16_28, %c0_29] : memref<48x24xbf16, #tpu.memory_space<vmem>>, vector<16x4xbf16>
    tpu.vector_store %arg15[%c16_28, %c0_29], %7 {strides = array<i32>} : memref<48x24xbf16, #tpu.memory_space<vmem>>, vector<16x4xbf16>,
    %c15_30 = arith.constant 15 : index
    %c0_31 = arith.constant 0 : index
    %23 = vector.load %arg15[%c15_30, %c0_31] : memref<48x24xbf16, #tpu.memory_space<vmem>>, vector<16x4xbf16>
    %c16_32 = arith.constant 16 : index
    %c0_33 = arith.constant 0 : index
    %24 = vector.load %arg15[%c16_32, %c0_33] : memref<48x24xbf16, #tpu.memory_space<vmem>>, vector<16x4xbf16>
    %25 = arith.maximumf %23, %24 : vector<16x4xbf16>
    %c17_34 = arith.constant 17 : index
    %c0_35 = arith.constant 0 : index
    %26 = vector.load %arg15[%c17_34, %c0_35] : memref<48x24xbf16, #tpu.memory_space<vmem>>, vector<16x4xbf16>
    %27 = arith.maximumf %25, %26 : vector<16x4xbf16>
    %c0_36 = arith.constant 0 : index
    %c40 = arith.constant 40 : index
    %28 = vector.load %arg16[%c0_36, %c40] : memref<16x64xbf16, #tpu.memory_space<vmem>>, vector<16x4xbf16>
    tpu.vector_store %arg16[%c0_36, %c40], %27 {strides = array<i32>} : memref<16x64xbf16, #tpu.memory_space<vmem>>, vector<16x4xbf16>,
    %c0_37 = arith.constant 0 : index
    %c0_38 = arith.constant 0 : index
    %29 = vector.load %arg16[%c0_37, %c0_38] : memref<16x64xbf16, #tpu.memory_space<vmem>>, vector<16x44xbf16>
    %c0_39 = arith.constant 0 : index
    %c0_40 = arith.constant 0 : index
    %30 = vector.load %arg3[%c0_39, %c0_40] : memref<44x24xbf16, #tpu.memory_space<vmem>>, vector<44x24xbf16>
    %cst_41 = arith.constant dense<0.000000e+00> : vector<16x24xf32>
    %31 = tpu.matmul %29, %30, %cst_41 {dimension_numbers = #tpu.dot_dimension_numbers<[1], [0], [0], [1], [0, 0, 1, 1], [], []>} : vector<16x44xbf16>, vector<44x24xbf16>, vector<16x24xf32> -> vector<16x24xf32>
    %c0_42 = arith.constant 0 : index
    %c0_43 = arith.constant 0 : index
    %32 = vector.load %arg4[%c0_42, %c0_43] : memref<1x24xf32, #tpu.memory_space<vmem>>, vector<1x24xf32>
    %33 = vector.broadcast %32 : vector<1x24xf32> to vector<16x24xf32>
    %34 = arith.addf %31, %33 : vector<16x24xf32>
    %cst_44 = arith.constant 0.000000e+00 : f32
    %35 = vector.broadcast %cst_44 : f32 to vector<16x24xf32>
    %36 = arith.maximumf %34, %35 : vector<16x24xf32>
    %37 = arith.truncf %36 : vector<16x24xf32> to vector<16x24xbf16>
    %c0_45 = arith.constant 0 : index
    %c0_46 = arith.constant 0 : index
    %38 = vector.load %arg5[%c0_45, %c0_46] : memref<24x8xbf16, #tpu.memory_space<vmem>>, vector<24x8xbf16>
    %cst_47 = arith.constant dense<0.000000e+00> : vector<16x8xf32>
    %39 = tpu.matmul %37, %38, %cst_47 {dimension_numbers = #tpu.dot_dimension_numbers<[1], [0], [0], [1], [0, 0, 1, 1], [], []>} : vector<16x24xbf16>, vector<24x8xbf16>, vector<16x8xf32> -> vector<16x8xf32>
    %40 = arith.truncf %39 : vector<16x8xf32> to vector<16x8xbf16>
    %c16_48 = arith.constant 16 : index
    %c0_49 = arith.constant 0 : index
    %41 = vector.load %arg14[%c16_48, %c0_49] : memref<48x8xbf16, #tpu.memory_space<vmem>>, vector<16x8xbf16>
    tpu.vector_store %arg14[%c16_48, %c0_49], %40 {strides = array<i32>} : memref<48x8xbf16, #tpu.memory_space<vmem>>, vector<16x8xbf16>,
    %c14_50 = arith.constant 14 : index
    %c0_51 = arith.constant 0 : index
    %42 = vector.load %arg14[%c14_50, %c0_51] : memref<48x8xbf16, #tpu.memory_space<vmem>>, vector<16x8xbf16>
    %c0_52 = arith.constant 0 : index
    %c0_53 = arith.constant 0 : index
    %43 = vector.load %arg16[%c0_52, %c0_53] : memref<16x64xbf16, #tpu.memory_space<vmem>>, vector<16x8xbf16>
    tpu.vector_store %arg16[%c0_52, %c0_53], %42 {strides = array<i32>} : memref<16x64xbf16, #tpu.memory_space<vmem>>, vector<16x8xbf16>,
    %c15_54 = arith.constant 15 : index
    %c0_55 = arith.constant 0 : index
    %44 = vector.load %arg14[%c15_54, %c0_55] : memref<48x8xbf16, #tpu.memory_space<vmem>>, vector<16x8xbf16>
    %c0_56 = arith.constant 0 : index
    %c8_57 = arith.constant 8 : index
    %45 = vector.load %arg16[%c0_56, %c8_57] : memref<16x64xbf16, #tpu.memory_space<vmem>>, vector<16x8xbf16>
    tpu.vector_store %arg16[%c0_56, %c8_57], %44 {strides = array<i32>} : memref<16x64xbf16, #tpu.memory_space<vmem>>, vector<16x8xbf16>,
    %c16_58 = arith.constant 16 : index
    %c0_59 = arith.constant 0 : index
    %46 = vector.load %arg14[%c16_58, %c0_59] : memref<48x8xbf16, #tpu.memory_space<vmem>>, vector<16x8xbf16>
    %c0_60 = arith.constant 0 : index
    %c16_61 = arith.constant 16 : index
    %47 = vector.load %arg16[%c0_60, %c16_61] : memref<16x64xbf16, #tpu.memory_space<vmem>>, vector<16x8xbf16>
    tpu.vector_store %arg16[%c0_60, %c16_61], %46 {strides = array<i32>} : memref<16x64xbf16, #tpu.memory_space<vmem>>, vector<16x8xbf16>,
    %c17_62 = arith.constant 17 : index
    %c0_63 = arith.constant 0 : index
    %48 = vector.load %arg14[%c17_62, %c0_63] : memref<48x8xbf16, #tpu.memory_space<vmem>>, vector<16x8xbf16>
    %c0_64 = arith.constant 0 : index
    %c24_65 = arith.constant 24 : index
    %49 = vector.load %arg16[%c0_64, %c24_65] : memref<16x64xbf16, #tpu.memory_space<vmem>>, vector<16x8xbf16>
    tpu.vector_store %arg16[%c0_64, %c24_65], %48 {strides = array<i32>} : memref<16x64xbf16, #tpu.memory_space<vmem>>, vector<16x8xbf16>,
    %c18_66 = arith.constant 18 : index
    %c0_67 = arith.constant 0 : index
    %50 = vector.load %arg14[%c18_66, %c0_67] : memref<48x8xbf16, #tpu.memory_space<vmem>>, vector<16x8xbf16>
    %c0_68 = arith.constant 0 : index
    %c32_69 = arith.constant 32 : index
    %51 = vector.load %arg16[%c0_68, %c32_69] : memref<16x64xbf16, #tpu.memory_space<vmem>>, vector<16x8xbf16>
    tpu.vector_store %arg16[%c0_68, %c32_69], %50 {strides = array<i32>} : memref<16x64xbf16, #tpu.memory_space<vmem>>, vector<16x8xbf16>,
    %c16_70 = arith.constant 16 : index
    %c0_71 = arith.constant 0 : index
    %52 = vector.load %arg15[%c16_70, %c0_71] : memref<48x24xbf16, #tpu.memory_space<vmem>>, vector<16x24xbf16>
    tpu.vector_store %arg15[%c16_70, %c0_71], %37 {strides = array<i32>} : memref<48x24xbf16, #tpu.memory_space<vmem>>, vector<16x24xbf16>,
    %c15_72 = arith.constant 15 : index
    %c0_73 = arith.constant 0 : index
    %53 = vector.load %arg15[%c15_72, %c0_73] : memref<48x24xbf16, #tpu.memory_space<vmem>>, vector<16x24xbf16>
    %c16_74 = arith.constant 16 : index
    %c0_75 = arith.constant 0 : index
    %54 = vector.load %arg15[%c16_74, %c0_75] : memref<48x24xbf16, #tpu.memory_space<vmem>>, vector<16x24xbf16>
    %55 = arith.maximumf %53, %54 : vector<16x24xbf16>
    %c17_76 = arith.constant 17 : index
    %c0_77 = arith.constant 0 : index
    %56 = vector.load %arg15[%c17_76, %c0_77] : memref<48x24xbf16, #tpu.memory_space<vmem>>, vector<16x24xbf16>
    %57 = arith.maximumf %55, %56 : vector<16x24xbf16>
    %c0_78 = arith.constant 0 : index
    %c40_79 = arith.constant 40 : index
    %58 = vector.load %arg16[%c0_78, %c40_79] : memref<16x64xbf16, #tpu.memory_space<vmem>>, vector<16x24xbf16>
    tpu.vector_store %arg16[%c0_78, %c40_79], %57 {strides = array<i32>} : memref<16x64xbf16, #tpu.memory_space<vmem>>, vector<16x24xbf16>,
    %c0_80 = arith.constant 0 : index
    %c0_81 = arith.constant 0 : index
    %59 = vector.load %arg16[%c0_80, %c0_81] : memref<16x64xbf16, #tpu.memory_space<vmem>>, vector<16x64xbf16>
    %c0_82 = arith.constant 0 : index
    %c0_83 = arith.constant 0 : index
    %60 = vector.load %arg6[%c0_82, %c0_83] : memref<64x24xbf16, #tpu.memory_space<vmem>>, vector<64x24xbf16>
    %cst_84 = arith.constant dense<0.000000e+00> : vector<16x24xf32>
    %61 = tpu.matmul %59, %60, %cst_84 {dimension_numbers = #tpu.dot_dimension_numbers<[1], [0], [0], [1], [0, 0, 1, 1], [], []>} : vector<16x64xbf16>, vector<64x24xbf16>, vector<16x24xf32> -> vector<16x24xf32>
    %c0_85 = arith.constant 0 : index
    %c0_86 = arith.constant 0 : index
    %62 = vector.load %arg7[%c0_85, %c0_86] : memref<1x24xf32, #tpu.memory_space<vmem>>, vector<1x24xf32>
    %63 = vector.broadcast %62 : vector<1x24xf32> to vector<16x24xf32>
    %64 = arith.addf %61, %63 : vector<16x24xf32>
    %cst_87 = arith.constant 0.000000e+00 : f32
    %65 = vector.broadcast %cst_87 : f32 to vector<16x24xf32>
    %66 = arith.maximumf %64, %65 : vector<16x24xf32>
    %67 = arith.truncf %66 : vector<16x24xf32> to vector<16x24xbf16>
    %c0_88 = arith.constant 0 : index
    %c0_89 = arith.constant 0 : index
    %68 = vector.load %arg8[%c0_88, %c0_89] : memref<24x8xbf16, #tpu.memory_space<vmem>>, vector<24x8xbf16>
    %cst_90 = arith.constant dense<0.000000e+00> : vector<16x8xf32>
    %69 = tpu.matmul %67, %68, %cst_90 {dimension_numbers = #tpu.dot_dimension_numbers<[1], [0], [0], [1], [0, 0, 1, 1], [], []>} : vector<16x24xbf16>, vector<24x8xbf16>, vector<16x8xf32> -> vector<16x8xf32>
    %70 = arith.truncf %69 : vector<16x8xf32> to vector<16x8xbf16>
    %c16_91 = arith.constant 16 : index
    %c0_92 = arith.constant 0 : index
    %71 = vector.load %arg14[%c16_91, %c0_92] : memref<48x8xbf16, #tpu.memory_space<vmem>>, vector<16x8xbf16>
    tpu.vector_store %arg14[%c16_91, %c0_92], %70 {strides = array<i32>} : memref<48x8xbf16, #tpu.memory_space<vmem>>, vector<16x8xbf16>,
    %c14_93 = arith.constant 14 : index
    %c0_94 = arith.constant 0 : index
    %72 = vector.load %arg14[%c14_93, %c0_94] : memref<48x8xbf16, #tpu.memory_space<vmem>>, vector<16x8xbf16>
    %c0_95 = arith.constant 0 : index
    %c0_96 = arith.constant 0 : index
    %73 = vector.load %arg16[%c0_95, %c0_96] : memref<16x64xbf16, #tpu.memory_space<vmem>>, vector<16x8xbf16>
    tpu.vector_store %arg16[%c0_95, %c0_96], %72 {strides = array<i32>} : memref<16x64xbf16, #tpu.memory_space<vmem>>, vector<16x8xbf16>,
    %c15_97 = arith.constant 15 : index
    %c0_98 = arith.constant 0 : index
    %74 = vector.load %arg14[%c15_97, %c0_98] : memref<48x8xbf16, #tpu.memory_space<vmem>>, vector<16x8xbf16>
    %c0_99 = arith.constant 0 : index
    %c8_100 = arith.constant 8 : index
    %75 = vector.load %arg16[%c0_99, %c8_100] : memref<16x64xbf16, #tpu.memory_space<vmem>>, vector<16x8xbf16>
    tpu.vector_store %arg16[%c0_99, %c8_100], %74 {strides = array<i32>} : memref<16x64xbf16, #tpu.memory_space<vmem>>, vector<16x8xbf16>,
    %c16_101 = arith.constant 16 : index
    %c0_102 = arith.constant 0 : index
    %76 = vector.load %arg14[%c16_101, %c0_102] : memref<48x8xbf16, #tpu.memory_space<vmem>>, vector<16x8xbf16>
    %c0_103 = arith.constant 0 : index
    %c16_104 = arith.constant 16 : index
    %77 = vector.load %arg16[%c0_103, %c16_104] : memref<16x64xbf16, #tpu.memory_space<vmem>>, vector<16x8xbf16>
    tpu.vector_store %arg16[%c0_103, %c16_104], %76 {strides = array<i32>} : memref<16x64xbf16, #tpu.memory_space<vmem>>, vector<16x8xbf16>,
    %c17_105 = arith.constant 17 : index
    %c0_106 = arith.constant 0 : index
    %78 = vector.load %arg14[%c17_105, %c0_106] : memref<48x8xbf16, #tpu.memory_space<vmem>>, vector<16x8xbf16>
    %c0_107 = arith.constant 0 : index
    %c24_108 = arith.constant 24 : index
    %79 = vector.load %arg16[%c0_107, %c24_108] : memref<16x64xbf16, #tpu.memory_space<vmem>>, vector<16x8xbf16>
    tpu.vector_store %arg16[%c0_107, %c24_108], %78 {strides = array<i32>} : memref<16x64xbf16, #tpu.memory_space<vmem>>, vector<16x8xbf16>,
    %c18_109 = arith.constant 18 : index
    %c0_110 = arith.constant 0 : index
    %80 = vector.load %arg14[%c18_109, %c0_110] : memref<48x8xbf16, #tpu.memory_space<vmem>>, vector<16x8xbf16>
    %c0_111 = arith.constant 0 : index
    %c32_112 = arith.constant 32 : index
    %81 = vector.load %arg16[%c0_111, %c32_112] : memref<16x64xbf16, #tpu.memory_space<vmem>>, vector<16x8xbf16>
    tpu.vector_store %arg16[%c0_111, %c32_112], %80 {strides = array<i32>} : memref<16x64xbf16, #tpu.memory_space<vmem>>, vector<16x8xbf16>,
    %c16_113 = arith.constant 16 : index
    %c0_114 = arith.constant 0 : index
    %82 = vector.load %arg15[%c16_113, %c0_114] : memref<48x24xbf16, #tpu.memory_space<vmem>>, vector<16x24xbf16>
    tpu.vector_store %arg15[%c16_113, %c0_114], %67 {strides = array<i32>} : memref<48x24xbf16, #tpu.memory_space<vmem>>, vector<16x24xbf16>,
    %c15_115 = arith.constant 15 : index
    %c0_116 = arith.constant 0 : index
    %83 = vector.load %arg15[%c15_115, %c0_116] : memref<48x24xbf16, #tpu.memory_space<vmem>>, vector<16x24xbf16>
    %c16_117 = arith.constant 16 : index
    %c0_118 = arith.constant 0 : index
    %84 = vector.load %arg15[%c16_117, %c0_118] : memref<48x24xbf16, #tpu.memory_space<vmem>>, vector<16x24xbf16>
    %85 = arith.maximumf %83, %84 : vector<16x24xbf16>
    %c17_119 = arith.constant 17 : index
    %c0_120 = arith.constant 0 : index
    %86 = vector.load %arg15[%c17_119, %c0_120] : memref<48x24xbf16, #tpu.memory_space<vmem>>, vector<16x24xbf16>
    %87 = arith.maximumf %85, %86 : vector<16x24xbf16>
    %c0_121 = arith.constant 0 : index
    %c40_122 = arith.constant 40 : index
    %88 = vector.load %arg16[%c0_121, %c40_122] : memref<16x64xbf16, #tpu.memory_space<vmem>>, vector<16x24xbf16>
    tpu.vector_store %arg16[%c0_121, %c40_122], %87 {strides = array<i32>} : memref<16x64xbf16, #tpu.memory_space<vmem>>, vector<16x24xbf16>,
    %c0_123 = arith.constant 0 : index
    %c0_124 = arith.constant 0 : index
    %89 = vector.load %arg16[%c0_123, %c0_124] : memref<16x64xbf16, #tpu.memory_space<vmem>>, vector<16x64xbf16>
    %c0_125 = arith.constant 0 : index
    %c0_126 = arith.constant 0 : index
    %90 = vector.load %arg9[%c0_125, %c0_126] : memref<64x24xbf16, #tpu.memory_space<vmem>>, vector<64x24xbf16>
    %cst_127 = arith.constant dense<0.000000e+00> : vector<16x24xf32>
    %91 = tpu.matmul %89, %90, %cst_127 {dimension_numbers = #tpu.dot_dimension_numbers<[1], [0], [0], [1], [0, 0, 1, 1], [], []>} : vector<16x64xbf16>, vector<64x24xbf16>, vector<16x24xf32> -> vector<16x24xf32>
    %c0_128 = arith.constant 0 : index
    %c0_129 = arith.constant 0 : index
    %92 = vector.load %arg10[%c0_128, %c0_129] : memref<1x24xf32, #tpu.memory_space<vmem>>, vector<1x24xf32>
    %93 = vector.broadcast %92 : vector<1x24xf32> to vector<16x24xf32>
    %94 = arith.addf %91, %93 : vector<16x24xf32>
    %cst_130 = arith.constant 0.000000e+00 : f32
    %95 = vector.broadcast %cst_130 : f32 to vector<16x24xf32>
    %96 = arith.maximumf %94, %95 : vector<16x24xf32>
    %c0_131 = arith.constant 0 : index
    %c0_132 = arith.constant 0 : index
    %97 = vector.load %arg11[%c0_131, %c0_132] : memref<4x24xbf16, #tpu.memory_space<vmem>>, vector<4x24xbf16>
    %cst_133 = arith.constant dense<0.000000e+00> : vector<16x24xf32>
    %98 = tpu.matmul %7, %97, %cst_133 {dimension_numbers = #tpu.dot_dimension_numbers<[1], [0], [0], [1], [0, 0, 1, 1], [], []>} : vector<16x4xbf16>, vector<4x24xbf16>, vector<16x24xf32> -> vector<16x24xf32>
    %99 = arith.addf %96, %98 : vector<16x24xf32>
    %c0_134 = arith.constant 0 : index
    %c0_135 = arith.constant 0 : index
    %100 = vector.load %arg12[%c0_134, %c0_135] : memref<1x24xf32, #tpu.memory_space<vmem>>, vector<1x24xf32>
    %101 = vector.broadcast %100 : vector<1x24xf32> to vector<16x24xf32>
    %102 = arith.addf %99, %101 : vector<16x24xf32>
    %cst_136 = arith.constant 0.000000e+00 : f32
    %103 = vector.broadcast %cst_136 : f32 to vector<16x24xf32>
    %104 = arith.maximumf %102, %103 : vector<16x24xf32>
    %105 = arith.truncf %104 : vector<16x24xf32> to vector<16x24xbf16>
    %c0_137 = arith.constant 0 : index
    %c0_138 = arith.constant 0 : index
    %c0_139 = arith.constant 0 : index
    %106 = vector.load %arg13[%c0_137, %c0_138, %c0_139] : memref<1x16x24xbf16, #tpu.memory_space<vmem>>, vector<1x16x24xbf16>
    %107 = vector.shape_cast %106 : vector<1x16x24xbf16> to vector<16x24xbf16>
    %108 = vector.shape_cast %105 : vector<16x24xbf16> to vector<1x16x24xbf16>
    tpu.vector_store %arg13[%c0_137, %c0_138, %c0_139], %108 {strides = array<i32>} : memref<1x16x24xbf16, #tpu.memory_space<vmem>>, vector<1x16x24xbf16>,
    return
  }
  func.func @transform_0(%arg0: i32) -> (i32, i32, i32) {
    %c0_i32 = arith.constant 0 : i32
    %c0_i32_0 = arith.constant 0 : i32
    %c0_i32_1 = arith.constant 0 : i32
    return %arg0, %c0_i32, %c0_i32_0 : i32, i32, i32
  }
  func.func @transform_1(%arg0: i32) -> (i32, i32) {
    %c0_i32 = arith.constant 0 : i32
    %c0_i32_0 = arith.constant 0 : i32
    %c0_i32_1 = arith.constant 0 : i32
    return %c0_i32, %c0_i32_0 : i32, i32
  }
  func.func @transform_2(%arg0: i32) -> (i32, i32) {
    %c0_i32 = arith.constant 0 : i32
    %c0_i32_0 = arith.constant 0 : i32
    %c0_i32_1 = arith.constant 0 : i32
    return %c0_i32, %c0_i32_0 : i32, i32
  }
  func.func @transform_3(%arg0: i32) -> (i32, i32) {
    %c0_i32 = arith.constant 0 : i32
    %c0_i32_0 = arith.constant 0 : i32
    %c0_i32_1 = arith.constant 0 : i32
    return %c0_i32, %c0_i32_0 : i32, i32
  }
  func.func @transform_4(%arg0: i32) -> (i32, i32) {
    %c0_i32 = arith.constant 0 : i32
    %c0_i32_0 = arith.constant 0 : i32
    %c0_i32_1 = arith.constant 0 : i32
    return %c0_i32, %c0_i32_0 : i32, i32
  }
  func.func @transform_5(%arg0: i32) -> (i32, i32) {
    %c0_i32 = arith.constant 0 : i32
    %c0_i32_0 = arith.constant 0 : i32
    %c0_i32_1 = arith.constant 0 : i32
    return %c0_i32, %c0_i32_0 : i32, i32
  }
  func.func @transform_6(%arg0: i32) -> (i32, i32) {
    %c0_i32 = arith.constant 0 : i32
    %c0_i32_0 = arith.constant 0 : i32
    %c0_i32_1 = arith.constant 0 : i32
    return %c0_i32, %c0_i32_0 : i32, i32
  }
  func.func @transform_7(%arg0: i32) -> (i32, i32) {
    %c0_i32 = arith.constant 0 : i32
    %c0_i32_0 = arith.constant 0 : i32
    %c0_i32_1 = arith.constant 0 : i32
    return %c0_i32, %c0_i32_0 : i32, i32
  }
  func.func @transform_8(%arg0: i32) -> (i32, i32) {
    %c0_i32 = arith.constant 0 : i32
    %c0_i32_0 = arith.constant 0 : i32
    %c0_i32_1 = arith.constant 0 : i32
    return %c0_i32, %c0_i32_0 : i32, i32
  }
  func.func @transform_9(%arg0: i32) -> (i32, i32) {
    %c0_i32 = arith.constant 0 : i32
    %c0_i32_0 = arith.constant 0 : i32
    %c0_i32_1 = arith.constant 0 : i32
    return %c0_i32, %c0_i32_0 : i32, i32
  }
  func.func @transform_10(%arg0: i32) -> (i32, i32) {
    %c0_i32 = arith.constant 0 : i32
    %c0_i32_0 = arith.constant 0 : i32
    %c0_i32_1 = arith.constant 0 : i32
    return %c0_i32, %c0_i32_0 : i32, i32
  }
  func.func @transform_11(%arg0: i32) -> (i32, i32) {
    %c0_i32 = arith.constant 0 : i32
    %c0_i32_0 = arith.constant 0 : i32
    %c0_i32_1 = arith.constant 0 : i32
    return %c0_i32, %c0_i32_0 : i32, i32
  }
  func.func @transform_12(%arg0: i32) -> (i32, i32, i32) {
    %c0_i32 = arith.constant 0 : i32
    %c0_i32_0 = arith.constant 0 : i32
    %c0_i32_1 = arith.constant 0 : i32
    return %arg0, %c0_i32, %c0_i32_0 : i32, i32, i32
  }
}

</mosaic_0001>

<bundles_post_ra>
// kernel: inception_backbone_forward.1
= control target key start
LH: loop header
LB: loop body
LE: loop exit
PB: predicated region body
PF: predicated region fallthrough
CT: control target
= control target key end

     0   :  { %s1547_s21 = smov 0   ;;  %s1740_s0 = inlined_call_operand.vmem [shape: bf16[2,16,4], index: 0, kind: input, shape index: {}]   ;;  %s1741_s1 = inlined_call_operand.vmem [shape: bf16[4,8], index: 1, kind: input, shape index: {}]   ;;  %s1742_s2 = inlined_call_operand.vmem [shape: bf16[44,24], index: 2, kind: input, shape index: {}]   ;;  %s1743_s3 = inlined_call_operand.vmem [shape: f32[1,24], index: 3, kind: input, shape index: {}]   ;;  %s1744_s4 = inlined_call_operand.vmem [shape: bf16[24,8], index: 4, kind: input, shape index: {}]   ;;  %s1745_s5 = inlined_call_operand.vmem [shape: bf16[64,24], index: 5, kind: input, shape index: {}]   ;;  %s1746_s6 = inlined_call_operand.vmem [shape: f32[1,24], index: 6, kind: input, shape index: {}]   ;;  %s1747_s7 = inlined_call_operand.vmem [shape: bf16[24,8], index: 7, kind: input, shape index: {}]   ;;  %s1748_s8 = inlined_call_operand.vmem [shape: bf16[64,24], index: 8, kind: input, shape index: {}]   ;;  %s1749_s9 = inlined_call_operand.vmem [shape: f32[1,24], index: 9, kind: input, shape index: {}]   ;;  %s1750_s10 = inlined_call_operand.vmem [shape: bf16[4,24], index: 10, kind: input, shape index: {}]   ;;  %s1751_s11 = inlined_call_operand.vmem [shape: f32[1,24], index: 11, kind: input, shape index: {}]   ;;  %s1752_s12 = inlined_call_operand.vmem [shape: bf16[2,16,24], index: 12, kind: output, shape index: {}]  }
   0x1 LB: > { %s1302_s22 = sadd.s32 4294967295, %s1471_s21   ;;  %p1306_p0 = scmp.ge.s32.totalorder %s1471_s21, 1  ;;  %s1471_s21 = sphi %s1547_s21, %s22_s21  }
   0x2   : > { %p362_p1 = scmp.lt.s32.totalorder %s1471_s21, 3 }
   0x4   : > { %p363_p2 = pnand %p1306_p0, %p362_p1 }
   0x5   : > { %v424_v0 = vld [vmem:[%s1741_s1] sm:$0x3] (!%p363_p2)  ;;  %vm434_vm0 = vcmask (!%p363_p2), 1041408   ;;  %v1473_v1 = vmov (!%p363_p2), 0.0   ;;  %p404_p3 = scmp.lt.s32.totalorder (!%p363_p2), %s1302_s22, 1  ;;  %vm1474_vm1 = vmmov (!%p363_p2), 0  }
   0x6   : > { %366 = sbr.rel (%p363_p2) target bundleno = 1767 (0x6e7), region = 68  ;;  %1370 = vmatprep.subr.bf16.mxu0 (!%p363_p2), %v1473_v1  ;;  %v436_v2 = vsel (!%p363_p2), %vm434_vm0, %v424_v0, 0  ;;  %1376 = vmatprep.subr.bf16.mxu1 (!%p363_p2), %v1473_v1  ;;  %vm430_vm2 = vcmask (!%p363_p2), 31744   ;;  %vm416_vm3 = vcmask (!%p363_p2), 64512   ;;  %v1475_v4 = vmov (!%p363_p2), 0   ;;  %v1450_v25 = vld [vmem:[%s1742_s2] sm:$0xff] (!%p363_p2)  }
   0x7   : > { %1371 = vmatpush3.bf16.msra.mxu0 (!%p363_p2), %v436_v2  ;;  %1372 = vmatprep.mubr.msk.bf16.mxu0 (!%p363_p2), %vm1474_vm1, %v1473_v1  ;;  %417 = vst.msk [vmem:[#allocation2] sm:$0xff] (!%p363_p2), %vm416_vm3, %v1475_v4  ;;  %418 = vst.msk [vmem:[#allocation2 + $0x10] sm:$0xff] (!%p363_p2), %vm416_vm3, %v1475_v4  ;;  %vm419_vm4 = vcmask (!%p363_p2), 195584   ;;  %v1476_v5 = vmov (!%p363_p2), 4286644096   ;;  %vm542_vm5 = vcmask (!%p363_p2), 1046528  }
   0x8   : > { %1382 = vmatprep.mubr.msk.bf16.mxu1 (!%p363_p2), %vm1474_vm1, %v1473_v1  ;;  %1386 = vmatprep.subr.bf16.mxu0 (!%p363_p2), %v1473_v1  ;;  %420 = vst.msk [vmem:[#allocation3] sm:$0xff] (!%p363_p2), %vm419_vm4, %v1476_v5  ;;  %421 = vst.msk [vmem:[#allocation3 + $0x10] sm:$0xff] (!%p363_p2), %vm419_vm4, %v1476_v5  ;;  %vm485_vm6 = vcmask (!%p363_p2), 1040384   ;;  %v1451_v33 = vld [vmem:[%s1742_s2 + $0x8] sm:$0xff] (!%p363_p2)   ;;  %s1477_s15 = smov (!%p363_p2), 16   ;;  %vm628_vm7 = vcmask (!%p363_p2), 1045504  }
   0x9   : > { %1377 = vmatpush3.bf16.msra.mxu1 (!%p363_p2), %v1450_v25  ;;  %v1452_v42 = vld [vmem:[%s1742_s2 + $0x10] sm:$0x3f] (!%p363_p2)   ;;  %vm520_vm8 = vsmask.f32 (!%p363_p2), 7424  ;;  %vm493_vm9 = vsmask.f32 (!%p363_p2), 256 }
   0xa   : > { %1378 = vmatprep.subr.bf16.mxu1 (!%p363_p2), %v1473_v1  ;;  %v630_v50 = vsel (!%p363_p2), %vm628_vm7, %v1452_v42, 0  ;;  %s1478_s18 = smov (!%p363_p2), 24   ;;  %s1479_s19 = smov (!%p363_p2), 8   ;;  %vm509_vm10 = vcmask (!%p363_p2), 130112   ;;  %vm516_vm11 = vcmask (!%p363_p2), 195712   ;;  %vm536_vm12 = vcmask (!%p363_p2), 261312  }
   0xb   : > { %s1480_s20 = smov (!%p363_p2), 32   ;;  %s1481_s23 = smov (!%p363_p2), 40   ;;  %vm549_vm13 = vcmask (!%p363_p2), 326912   ;;  %vm591_vm14 = vcmask (!%p363_p2), 359744   ;;  %vm624_vm15 = vcmask (!%p363_p2), 359424   ;;  %v1453_v5 = vld [vmem:[%s1744_s4] sm:$0xff] (!%p363_p2)  }
   0xc   : > { %vm691_vm7 = vcmask (!%p363_p2), 1043456  }
   0xd   : > { %s1754_s22 = smov (!%p404_p3, %s1302_s22), 1  ;;  %1379 = vmatpush3.bf16.msra.mxu1 %v1451_v33 }
   0xe   : > { %s1342_s25 = sshll.u32 %s1754_s22, 3  ;;  %v519_v24 = vld [vmem:[#allocation2 + $0x10] sm:$0x1]  ;;  %v491_v26 = vld [vmem:[#allocation2] sm:$0x80]  ;;  %1380 = vmatprep.subr.bf16.mxu1 %v1473_v1 }
   0xf   : > { %s408_s28 = scalar_lea.vmem %s1740_s0, %s1342_s25  ;;  %v566_v10 = vld [vmem:[#allocation3 + $0x10] sm:$0x1]  ;;  %v553_v17 = vld [vmem:[#allocation3] sm:$0x80]  ;;  %v481_v29 = vld [vmem:[#allocation2] sm:$0x80]  ;;  %s413_s26 = scalar_lea.vmem %s1752_s12, %s1342_s25 }
  0x10   : > { %v1574_v3 = vld [vmem:[%s408_s28] sm:$0xff]   ;;  %v570_v13 = vrot.slane %v566_v10, 1  ;;  %v529_v30 = vshll.u32 %v519_v24, 16  ;;  %v495_v31 = vshrl.u32 %v491_v26, 16  ;;  %v486_v32 = vrot.slane %v481_v29, 7 }
  0x11   : > { %1373 = vmatmul.mubr.msk.bf16.vlgmr.msra.gmra.mrb[0].mxu0 %vm430_vm2, %v1574_v3  ;;  %552 = vst.msk [vmem:[#allocation3 + $0x8] sm:$0xff] %vm430_vm2, %v1574_v3  ;;  %v539_v47 = vld [vmem:[#allocation2 + $0x10] sm:$0x1]  ;;  %1381 = vmatpush3.bf16.msra.mxu1 %v630_v50  ;;  %v814_v26 = vld [vmem:[#allocation3 + $0x10] sm:$0x1] }
  0x12   : > { %1390 = vmatprep.mubr.msk.bf16.mxu0 %vm1474_vm1, %v1473_v1  ;;  %v531_v43 = vrot.slane %v529_v30, 1  ;;  %v497_v45 = vrot.slane %v495_v31, 7  ;;  %1406 = vmatprep.subr.bf16.mxu1 %v1473_v1  ;;  %v544_v58 = vrot.slane %v539_v47, 1  ;;  %v818_v30 = vrot.slane %v814_v26, 1  ;;  %v747_v33 = vld [vmem:[#allocation2] sm:$0x80] }
  0x13   : > { %1387 = vmatpush3.bf16.msra.mxu0 %v1453_v5  ;;  %v772_v42 = vld [vmem:[#allocation2 + $0x10] sm:$0x1] }
  0x14   : > { %1388 = vmatprep.subr.bf16.mxu0 %v1473_v1 }
  0x18   : > { %v554_v6 = vld [vmem:[#allocation3 + $0x8] sm:$0xff] }
  0x19   : > { %v556_v7 = vshll.u32 %v554_v6, 16  ;;  %v559_v9 = vshrl.u32 %v554_v6, 16  ;;  %v569_v12 = vrot.slane %v554_v6, 1 }
  0x1b   : > { %v558_v8 = vrot.slane %v556_v7, 1  ;;  %v571_v18 = vsel %vm542_vm5, %v569_v12, %v570_v13 }
  0x1d   : > { %v561_v11 = vor.u32 %v559_v9, %v558_v8  ;;  %v564_v22 = vmax.bf16 %v558_v8, %v553_v17  ;;  %v1313_v8 = vld [vmem:[%s1743_s3] ss:$0 sm:$0xff] }
  0x1f   : > { %v565_v15 = vmax.bf16 %v561_v11, %v554_v6  ;;  %v574_v27 = vmax.bf16 %v569_v12, %v564_v22  ;;  %v1454_v6 = vld [vmem:[%s1744_s4 + $0x8] ss:$0 sps:$4 sm:$0xff]  }
  0x20   : > { %v693_v7 = vsel %vm691_vm7, %v1454_v6, 0 }
  0x21   : > { %v575_v23 = vmax.bf16 %v571_v18, %v565_v15  ;;  %v577_v35 = vshrl.u32 %v574_v27, 16  ;;  %1389 = vmatpush3.bf16.msra.mxu0 %v693_v7 }
  0x22   : > { %1394 = vmatprep.subr.bf16.mxu0 %v1473_v1 }
  0x23   : > { %v581_v28 = vshrl.u32 %v575_v23, 16  ;;  %v584_v37 = vshll.u32 %v575_v23, 16  ;;  %v579_v53 = vrot.slane %v577_v35, 7  ;;  %v738_v35 = vld [vmem:[#allocation2] sm:$0x80] }
  0x25   : > { %v583_v36 = vrot.slane %v581_v28, 7 }
  0x27   : > { %v586_v54 = vor.u32 %v584_v37, %v583_v36  ;;  %v801_v36 = vld [vmem:[#allocation3] sm:$0x80] }
  0x29   : > { %v587_v59 = vsel %vm493_vm9, %v579_v53, %v586_v54  ;;  %v781_v53 = vshll.u32 %v772_v42, 16 }
  0xe4   : > { %v472_v14 = vpop.f32.mrb[0].mxu0 }
  0xe5   : > { %v1374_v16 = vpop.f32.mrb[1].mxu0 }
  0xe6   : > { %v475_v19 = vpop.f32.mrb[2].mxu0 }
  0xe7   : > { %v479_v20 = vpack.c.bf16 %v475_v19, %v472_v14  ;;  %v1375_v21 = vpop.f32.mrb[3].mxu0 }
  0xe9   : > { %480 = vst.msk [vmem:[#allocation2 + $0x8] sm:$0xff] %vm416_vm3, %v479_v20 }
  0xf0   : > { %v511_v34 = vld [vmem:[#allocation2 + $0x8] sm:$0xff] }
  0xf1   : > { %v482_v38 = vld [vmem:[#allocation2 + $0x8] sm:$0x7f]  ;;  %513 = vrot.lane.b32.xlu0 %v511_v34, %s1477_s15  ;;  %v522_v39 = vshrl.u32 %v511_v34, 16  ;;  %v524_v40 = vshll.u32 %v511_v34, 16  ;;  %v790_v34 = vld [vmem:[#allocation2 + $0x10] sm:$0x1] }
  0xf2   : > { %v487_v41 = vrot.slane %v482_v38, 7  ;;  %v538_v49 = vld [vmem:[#allocation2 + $0x8] sm:$0xfe]  ;;  %v750_v38 = vshrl.u32 %v747_v33, 16 }
  0xf3   : > { %v526_v44 = vrot.slane %v524_v40, 1  ;;  %v501_v46 = vrot.slane %v522_v39, 7  ;;  %v543_v57 = vrot.slane %v538_v49, 1 }
  0xf4   : > { %v488_v48 = vsel %vm485_vm6, %v486_v32, %v487_v41  ;;  %v1455_v32 = vld [vmem:[%s1745_s5] sm:$0xff]   ;;  %v794_v41 = vrot.slane %v790_v34, 1 }
  0xf5   : > { %490 = vst.msk [vmem:[#allocation4] sm:$0xff] %vm416_vm3, %v488_v48  ;;  %v527_v51 = vor.u32 %v526_v44, %v522_v39  ;;  %v504_v52 = vor.u32 %v524_v40, %v501_v46  ;;  %v545_v60 = vsel %vm542_vm5, %v543_v57, %v544_v58  ;;  %v1456_v40 = vld [vmem:[%s1745_s5 + $0x8] sm:$0xff]  }
  0xf7   : > { %v532_v55 = vsel %vm520_vm8, %v527_v51, %v531_v43  ;;  %v505_v56 = vsel %vm493_vm9, %v497_v45, %v504_v52  ;;  %v742_v43 = vrot.slane %v738_v35, 7  ;;  %v752_v52 = vrot.slane %v750_v38, 7 }
  0xf8   : > { %533 = vrot.lane.b32.xlu1 %v532_v55, %s1478_s18  ;;  %506 = vrot.lane.b32.xlu0 %v505_v56, %s1479_s19  ;;  %v1457_v55 = vld [vmem:[%s1745_s5 + $0x10] sm:$0xff]  }
  0xfc   : > { %546 = vrot.lane.b32.xlu1 %v545_v60, %s1480_s20  ;;  %588 = vrot.lane.b32.xlu0 %v587_v59, %s1481_s23  ;;  %v1458_v60 = vld [vmem:[%s1745_s5 + $0x18] sm:$0xff]  }
 0x163   : > { %v514_v61 = vpop.permute.xlu0 %513 }
 0x16a   : > { %v534_v62 = vpop.permute.xlu1 %533  ;;  %v507_v63 = vpop.permute.xlu0 %506 }
 0x16b   : > { %510 = vst.msk [vmem:[#allocation4] sm:$0xff] %vm509_vm10, %v507_v63 }
 0x16c   : > { %517 = vst.msk [vmem:[#allocation4] sm:$0xff] %vm516_vm11, %v514_v61 }
 0x16d   : > { %537 = vst.msk [vmem:[#allocation4] sm:$0xff] %vm536_vm12, %v534_v62 }
 0x16e   : > { %v547_v0 = vpop.permute.xlu1 %546  ;;  %v589_v2 = vpop.permute.xlu0 %588 }
 0x16f   : > { %550 = vst.msk [vmem:[#allocation4] sm:$0xff] %vm549_vm13, %v547_v0 }
 0x170   : > { %592 = vst.msk [vmem:[#allocation4] sm:$0xff] %vm591_vm14, %v589_v2  ;;  %v783_v2 = vrot.slane %v781_v53, 1  ;;  %vm839_vm14 = vcmask 523584   ;;  %v1462_v53 = vld [vmem:[%s1748_s8 + $0x8] sm:$0xff]  }
 0x177   : > { %v593_v4 = vld [vmem:[#allocation4] sm:$0xff] }
 0x178   : > { %1383 = vmatmul.mubr.msk.bf16.vlgmr.msra.gmra.mrb[0].mxu1 %vm624_vm15, %v593_v4  ;;  %vm881_vm15 = vcmask 523264  }
 0x179   : > { %1410 = vmatprep.mubr.msk.bf16.mxu1 %vm1474_vm1, %v1473_v1 }
 0x24b   : > { %v666_v9 = vpop.f32.mrb[0].mxu1 }
 0x24c   : > { %v667_v10 = vadd.f32 %v1313_v8, %v666_v9  ;;  %v1384_v11 = vpop.f32.mrb[1].mxu1 }
 0x24d   : > { %v669_v12 = vpop.f32.mrb[2].mxu1 }
 0x24e   : > { %v670_v13 = vadd.f32 %v1313_v8, %v669_v12  ;;  %v1385_v14 = vpop.f32.mrb[3].mxu1  ;;  %v673_v15 = vmax.f32 %v667_v10, 0.0 }
 0x250   : > { %v674_v16 = vmax.f32 %v670_v13, 0.0 }
 0x252   : > { %v675_v17 = vpack.c.bf16 %v674_v16, %v673_v15  ;;  %v1178_v16 = vld [vmem:[%s1750_s10] sm:$0x3] }
 0x254   : > { %800 = vst.msk [vmem:[#allocation3 + $0x8] sm:$0xff] %vm419_vm4, %v675_v17  ;;  %1391 = vmatmul.mubr.msk.bf16.vlgmr.msra.gmra.mrb[4].mxu0 %vm419_vm4, %v675_v17  ;;  %v1180_v17 = vsel %vm434_vm0, %v1178_v16, 0  ;;  %vm1244_vm0 = vcmask 191488  }
 0x255   : > { %1402 = vmatprep.mubr.msk.bf16.mxu0 %vm1474_vm1, %v1473_v1  ;;  %1395 = vmatpush3.bf16.msra.mxu0 %v1455_v32 }
 0x256   : > { %1396 = vmatprep.subr.bf16.mxu0 %v1473_v1 }
 0x259   : > { %1397 = vmatpush3.bf16.msra.mxu0 %v1456_v40 }
 0x25a   : > { %1398 = vmatprep.subr.bf16.mxu0 %v1473_v1 }
 0x25b   : > { %v802_v18 = vld [vmem:[#allocation3 + $0x8] sm:$0xff] }
 0x25c   : > { %v804_v19 = vshll.u32 %v802_v18, 16  ;;  %v807_v22 = vshrl.u32 %v802_v18, 16  ;;  %v817_v29 = vrot.slane %v802_v18, 1 }
 0x25d   : > { %1399 = vmatpush3.bf16.msra.mxu0 %v1457_v55  ;;  %v1024_v55 = vld [vmem:[#allocation2 + $0x10] sm:$0x1] }
 0x25e   : > { %v806_v20 = vrot.slane %v804_v19, 1  ;;  %v819_v37 = vsel %vm542_vm5, %v817_v29, %v818_v30  ;;  %1400 = vmatprep.subr.bf16.mxu0 %v1473_v1  ;;  %v1459_v19 = vld [vmem:[%s1747_s7] sm:$0xff]  }
 0x25f   : > { %1407 = vmatpush3.bf16.msra.mxu1 %v1459_v19 }
 0x260   : > { %v809_v25 = vor.u32 %v807_v22, %v806_v20  ;;  %v812_v46 = vmax.bf16 %v806_v20, %v801_v36  ;;  %1408 = vmatprep.subr.bf16.mxu1 %v1473_v1  ;;  %v1460_v20 = vld [vmem:[%s1747_s7 + $0x8] ss:$0 sps:$4 sm:$0xff]  }
 0x261   : > { %1401 = vmatpush3.bf16.msra.mxu0 %v1458_v60 }
 0x262   : > { %v813_v31 = vmax.bf16 %v809_v25, %v802_v18  ;;  %v822_v62 = vmax.bf16 %v817_v29, %v812_v46  ;;  %1426 = vmatprep.subr.bf16.mxu0 %v1473_v1  ;;  %v999_v46 = vld [vmem:[#allocation2] sm:$0x80] }
 0x264   : > { %v823_v39 = vmax.bf16 %v819_v37, %v813_v31  ;;  %v825_v5 = vshrl.u32 %v822_v62, 16 }
 0x266   : > { %v829_v54 = vshrl.u32 %v823_v39, 16  ;;  %v832_v6 = vshll.u32 %v823_v39, 16  ;;  %v827_v9 = vrot.slane %v825_v5, 7  ;;  %v1066_v39 = vld [vmem:[#allocation3 + $0x10] sm:$0x1] }
 0x268   : > { %v831_v4 = vrot.slane %v829_v54, 7 }
 0x26a   : > { %v834_v8 = vor.u32 %v832_v6, %v831_v4  ;;  %v1033_v4 = vshll.u32 %v1024_v55, 16  ;;  %v1463_v6 = vld [vmem:[%s1748_s8 + $0x10] sm:$0xff]  }
 0x26c   : > { %v835_v10 = vsel %vm493_vm9, %v827_v9, %v834_v8  ;;  %v1035_v16 = vrot.slane %v1033_v4, 1 }
 0x327   : > { %v729_v21 = vpop.f32.mrb[4].mxu0 }
 0x328   : > { %v1392_v23 = vpop.f32.mrb[5].mxu0 }
 0x329   : > { %v732_v24 = vpop.f32.mrb[6].mxu0 }
 0x32a   : > { %v736_v27 = vpack.c.bf16 %v732_v24, %v729_v21  ;;  %v1393_v28 = vpop.f32.mrb[7].mxu0  ;;  %v945_v21 = vsel %vm691_vm7, %v1460_v20, 0 }
 0x32b   : > { %1409 = vmatpush3.bf16.msra.mxu1 %v945_v21 }
 0x32c   : > { %737 = vst.msk [vmem:[#allocation2 + $0x8] sm:$0xff] %vm416_vm3, %v736_v27  ;;  %1414 = vmatprep.subr.bf16.mxu1 %v1473_v1 }
 0x333   : > { %v765_v44 = vld [vmem:[#allocation2 + $0x8] sm:$0xff] }
 0x334   : > { %v789_v45 = vld [vmem:[#allocation2 + $0x8] sm:$0xfe]  ;;  %767 = vrot.lane.b32.xlu0 %v765_v44, %s1477_s15  ;;  %v754_v49 = vshrl.u32 %v765_v44, 16  ;;  %v757_v50 = vshll.u32 %v765_v44, 16 }
 0x335   : > { %v739_v47 = vld [vmem:[#allocation2 + $0x8] sm:$0x7f]  ;;  %v793_v48 = vrot.slane %v789_v45, 1  ;;  %v1461_v45 = vld [vmem:[%s1748_s8] sm:$0xff]  }
 0x336   : > { %v743_v51 = vrot.slane %v739_v47, 7  ;;  %v756_v57 = vrot.slane %v754_v49, 7  ;;  %v778_v58 = vrot.slane %v757_v50, 1  ;;  %v1042_v47 = vld [vmem:[#allocation2 + $0x10] sm:$0x1] }
 0x337   : > { %v795_v56 = vsel %vm542_vm5, %v793_v48, %v794_v41  ;;  %v990_v48 = vld [vmem:[#allocation2] sm:$0x80]  ;;  %v1046_v54 = vrot.slane %v1042_v47, 1 }
 0x338   : > { %v744_v59 = vsel %vm485_vm6, %v742_v43, %v743_v51  ;;  %796 = vrot.lane.b32.xlu0 %v795_v56, %s1480_s20  ;;  %v759_v61 = vor.u32 %v757_v50, %v756_v57  ;;  %v779_v0 = vor.u32 %v778_v58, %v754_v49  ;;  %v1070_v43 = vrot.slane %v1066_v39, 1  ;;  %v1053_v49 = vld [vmem:[#allocation3] sm:$0x80] }
 0x339   : > { %746 = vst.msk [vmem:[#allocation4] sm:$0xff] %vm416_vm3, %v744_v59  ;;  %v1002_v51 = vshrl.u32 %v999_v46, 16  ;;  %v994_v56 = vrot.slane %v990_v48, 7 }
 0x33a   : > { %v760_v63 = vsel %vm493_vm9, %v752_v52, %v759_v61  ;;  %v784_v7 = vsel %vm520_vm8, %v779_v0, %v783_v2 }
 0x33b   : > { %761 = vrot.lane.b32.xlu1 %v760_v63, %s1479_s19  ;;  %v1004_v2 = vrot.slane %v1002_v51, 7 }
 0x33f   : > { %785 = vrot.lane.b32.xlu1 %v784_v7, %s1478_s18 }
 0x343   : > { %836 = vrot.lane.b32.xlu1 %v835_v10, %s1481_s23 }
 0x3a6   : > { %v768_v11 = vpop.permute.xlu0 %767 }
 0x3aa   : > { %v797_v14 = vpop.permute.xlu0 %796 }
 0x3ad   : > { %v762_v12 = vpop.permute.xlu1 %761 }
 0x3ae   : > { %764 = vst.msk [vmem:[#allocation4] sm:$0xff] %vm509_vm10, %v762_v12 }
 0x3af   : > { %770 = vst.msk [vmem:[#allocation4] sm:$0xff] %vm516_vm11, %v768_v11  ;;  %v1464_v11 = vld [vmem:[%s1748_s8 + $0x18] sm:$0xff]  }
 0x3b1   : > { %v786_v13 = vpop.permute.xlu1 %785 }
 0x3b2   : > { %788 = vst.msk [vmem:[#allocation4] sm:$0xff] %vm536_vm12, %v786_v13 }
 0x3b3   : > { %799 = vst.msk [vmem:[#allocation4] sm:$0xff] %vm549_vm13, %v797_v14 }
 0x3b5   : > { %v837_v15 = vpop.permute.xlu1 %836 }
 0x3b6   : > { %840 = vst.msk [vmem:[#allocation4] sm:$0xff] %vm839_vm14, %v837_v15 }
 0x3bd   : > { %v841_v18 = vld [vmem:[#allocation4] sm:$0xff] }
 0x3be   : > { %1403 = vmatmul.mubr.msk.bf16.vlgmr.msra.gmra.mrb[8].mxu0 %vm881_vm15, %v841_v18 }
 0x3bf   : > { %1427 = vmatpush3.bf16.msra.mxu0 %v1180_v17  ;;  %1428 = vmatprep.mubr.msk.bf16.mxu0 %vm1474_vm1, %v1473_v1 }
 0x3c6   : > { %1429 = vmatmul.mubr.msk.bf16.vlgmr.msra.gmra.mrb[12].mxu0 %vm430_vm2, %v1574_v3  ;;  %v1321_v3 = vld [vmem:[%s1746_s6] ss:$0 sm:$0xff] }
 0x491   : > { %v919_v22 = vpop.f32.mrb[8].mxu0 }
 0x492   : > { %v920_v23 = vadd.f32 %v1321_v3, %v919_v22  ;;  %v1404_v24 = vpop.f32.mrb[9].mxu0 }
 0x493   : > { %v922_v25 = vpop.f32.mrb[10].mxu0 }
 0x494   : > { %v923_v26 = vadd.f32 %v1321_v3, %v922_v25  ;;  %v1405_v27 = vpop.f32.mrb[11].mxu0  ;;  %v926_v28 = vmax.f32 %v920_v23, 0.0 }
 0x496   : > { %v927_v29 = vmax.f32 %v923_v26, 0.0 }
 0x498   : > { %v928_v30 = vpack.c.bf16 %v927_v29, %v926_v28 }
 0x499   : > { %v1216_v28 = vpop.f32.mrb[12].mxu0 }
 0x49a   : > { %1052 = vst.msk [vmem:[#allocation3 + $0x8] sm:$0xff] %vm419_vm4, %v928_v30  ;;  %1411 = vmatmul.mubr.msk.bf16.vlgmr.msra.gmra.mrb[4].mxu1 %vm419_vm4, %v928_v30  ;;  %v1430_v29 = vpop.f32.mrb[13].mxu0 }
 0x49b   : > { %1422 = vmatprep.mubr.msk.bf16.mxu1 %vm1474_vm1, %v1473_v1  ;;  %1415 = vmatpush3.bf16.msra.mxu1 %v1461_v45  ;;  %v1219_v30 = vpop.f32.mrb[14].mxu0 }
 0x49c   : > { %1416 = vmatprep.subr.bf16.mxu1 %v1473_v1 }
 0x49f   : > { %1417 = vmatpush3.bf16.msra.mxu1 %v1462_v53 }
 0x4a0   : > { %1418 = vmatprep.subr.bf16.mxu1 %v1473_v1 }
 0x4a1   : > { %v1054_v31 = vld [vmem:[#allocation3 + $0x8] sm:$0xff] }
 0x4a2   : > { %v1056_v32 = vshll.u32 %v1054_v31, 16  ;;  %v1059_v35 = vshrl.u32 %v1054_v31, 16  ;;  %v1069_v42 = vrot.slane %v1054_v31, 1 }
 0x4a3   : > { %1419 = vmatpush3.bf16.msra.mxu1 %v1463_v6 }
 0x4a4   : > { %v1058_v33 = vrot.slane %v1056_v32, 1  ;;  %v1071_v50 = vsel %vm542_vm5, %v1069_v42, %v1070_v43  ;;  %1420 = vmatprep.subr.bf16.mxu1 %v1473_v1  ;;  %v1330_v32 = vld [vmem:[%s1749_s9] ss:$0 sm:$0xff] }
 0x4a6   : > { %v1061_v38 = vor.u32 %v1059_v35, %v1058_v33  ;;  %v1064_v59 = vmax.bf16 %v1058_v33, %v1053_v49 }
 0x4a7   : > { %1421 = vmatpush3.bf16.msra.mxu1 %v1464_v11 }
 0x4a8   : > { %v1065_v44 = vmax.bf16 %v1061_v38, %v1054_v31  ;;  %v1074_v13 = vmax.bf16 %v1069_v42, %v1064_v59  ;;  %v1431_v31 = vpop.f32.mrb[15].mxu0 }
 0x4aa   : > { %v1075_v52 = vmax.bf16 %v1071_v50, %v1065_v44  ;;  %v1077_v18 = vshrl.u32 %v1074_v13, 16 }
 0x4ac   : > { %v1081_v5 = vshrl.u32 %v1075_v52, 16  ;;  %v1084_v19 = vshll.u32 %v1075_v52, 16  ;;  %v1079_v3 = vrot.slane %v1077_v18, 7 }
 0x4ae   : > { %v1083_v17 = vrot.slane %v1081_v5, 7 }
 0x4b0   : > { %v1086_v21 = vor.u32 %v1084_v19, %v1083_v17 }
 0x4b2   : > { %v1087_v22 = vsel %vm493_vm9, %v1079_v3, %v1086_v21 }
 0x56d   : > { %v981_v34 = vpop.f32.mrb[4].mxu1 }
 0x56e   : > { %v1412_v36 = vpop.f32.mrb[5].mxu1 }
 0x56f   : > { %v984_v37 = vpop.f32.mrb[6].mxu1 }
 0x570   : > { %v988_v40 = vpack.c.bf16 %v984_v37, %v981_v34  ;;  %v1413_v41 = vpop.f32.mrb[7].mxu1 }
 0x572   : > { %989 = vst.msk [vmem:[#allocation2 + $0x8] sm:$0xff] %vm416_vm3, %v988_v40  ;;  %v1337_v40 = vld [vmem:[%s1751_s11] ss:$0 sm:$0xff] }
 0x579   : > { %v1017_v57 = vld [vmem:[#allocation2 + $0x8] sm:$0xff] }
 0x57a   : > { %v1041_v58 = vld [vmem:[#allocation2 + $0x8] sm:$0xfe]  ;;  %1019 = vrot.lane.b32.xlu1 %v1017_v57, %s1477_s15  ;;  %v1006_v62 = vshrl.u32 %v1017_v57, 16  ;;  %v1009_v63 = vshll.u32 %v1017_v57, 16 }
 0x57b   : > { %v991_v60 = vld [vmem:[#allocation2 + $0x8] sm:$0x7f]  ;;  %v1045_v61 = vrot.slane %v1041_v58, 1 }
 0x57c   : > { %v995_v0 = vrot.slane %v991_v60, 7  ;;  %v1008_v8 = vrot.slane %v1006_v62, 7  ;;  %v1030_v9 = vrot.slane %v1009_v63, 1 }
 0x57d   : > { %v1047_v7 = vsel %vm542_vm5, %v1045_v61, %v1046_v54 }
 0x57e   : > { %v996_v10 = vsel %vm485_vm6, %v994_v56, %v995_v0  ;;  %1048 = vrot.lane.b32.xlu1 %v1047_v7, %s1480_s20  ;;  %v1011_v12 = vor.u32 %v1009_v63, %v1008_v8  ;;  %v1031_v15 = vor.u32 %v1030_v9, %v1006_v62 }
 0x57f   : > { %998 = vst.msk [vmem:[#allocation4] sm:$0xff] %vm416_vm3, %v996_v10 }
 0x580   : > { %v1012_v14 = vsel %vm493_vm9, %v1004_v2, %v1011_v12  ;;  %v1036_v20 = vsel %vm520_vm8, %v1031_v15, %v1035_v16 }
 0x581   : > { %1013 = vrot.lane.b32.xlu0 %v1012_v14, %s1479_s19 }
 0x585   : > { %1037 = vrot.lane.b32.xlu0 %v1036_v20, %s1478_s18 }
 0x589   : > { %1088 = vrot.lane.b32.xlu0 %v1087_v22, %s1481_s23 }
 0x5ec   : > { %v1020_v1 = vpop.permute.xlu1 %1019 }
 0x5f0   : > { %v1049_v25 = vpop.permute.xlu1 %1048 }
 0x5f3   : > { %v1014_v23 = vpop.permute.xlu0 %1013 }
 0x5f4   : > { %1016 = vst.msk [vmem:[#allocation4] sm:$0xff] %vm509_vm10, %v1014_v23 }
 0x5f5   : > { %1022 = vst.msk [vmem:[#allocation4] sm:$0xff] %vm516_vm11, %v1020_v1 }
 0x5f7   : > { %v1038_v24 = vpop.permute.xlu0 %1037 }
 0x5f8   : > { %1040 = vst.msk [vmem:[#allocation4] sm:$0xff] %vm536_vm12, %v1038_v24 }
 0x5f9   : > { %1051 = vst.msk [vmem:[#allocation4] sm:$0xff] %vm549_vm13, %v1049_v25 }
 0x5fb   : > { %v1089_v26 = vpop.permute.xlu0 %1088 }
 0x5fc   : > { %1091 = vst.msk [vmem:[#allocation4] sm:$0xff] %vm839_vm14, %v1089_v26 }
 0x603   : > { %v1092_v27 = vld [vmem:[#allocation4] sm:$0xff] }
 0x604   : > { %1423 = vmatmul.mubr.msk.bf16.vlgmr.msra.gmra.mrb[8].mxu1 %vm881_vm15, %v1092_v27 }
 0x6d7   : > { %v1169_v33 = vpop.f32.mrb[8].mxu1 }
 0x6d8   : > { %v1170_v34 = vadd.f32 %v1330_v32, %v1169_v33  ;;  %v1424_v35 = vpop.f32.mrb[9].mxu1 }
 0x6d9   : > { %v1172_v36 = vpop.f32.mrb[10].mxu1 }
 0x6da   : > { %v1176_v37 = vmax.f32 %v1170_v34, 0.0  ;;  %v1173_v38 = vadd.f32 %v1330_v32, %v1172_v36  ;;  %v1425_v39 = vpop.f32.mrb[11].mxu1 }
 0x6dc   : > { %v1223_v41 = vadd.f32 %v1216_v28, %v1176_v37  ;;  %v1177_v42 = vmax.f32 %v1173_v38, 0.0 }
 0x6de   : > { %v1232_v43 = vadd.f32 %v1337_v40, %v1223_v41  ;;  %v1224_v44 = vadd.f32 %v1219_v30, %v1177_v42 }
 0x6e0   : > { %v1234_v45 = vmax.f32 %v1232_v43, 0.0  ;;  %v1233_v46 = vadd.f32 %v1337_v40, %v1224_v44 }
 0x6e2   : > { %v1344_v47 = vpack.c.bf16 %v1234_v45, %v1234_v45  ;;  %v1235_v48 = vmax.f32 %v1233_v46, 0.0 }
 0x6e4   : > { %1245 = vst.msk [vmem:[%s413_s26] sm:$0xf] %vm1244_vm0, %v1344_v47  ;;  %v1345_v49 = vpack.c.bf16 %v1235_v48, %v1235_v48 }
 0x6e6   : > { %1246 = vst.msk [vmem:[%s413_s26 + $0x4] sm:$0xf] %vm1244_vm0, %v1345_v49 }
 0x6e7 PF: > { %s22_s21 = sadd.s32 1, %s1471_s21  }
 0x6e8   : > { %p19_p4 = scmp.ge.s32.totalorder %s22_s21, 4  }
 0x6ea   :  { %21 = sbr.rel (!%p19_p4) target bundleno = 1 (0x1), region = 98 }

</bundles_post_ra>
